<compile_context>
chip_gen: v7x
topology: tpu7x:2x2x1
jax: 0.10.0
libtpu: 0.0.40
codegen_flags: <defaults>
</compile_context>

<pallas_src>
import jax
import jax.numpy as jnp
from jax.experimental import pallas as pl
from jax.experimental.pallas import tpu as pltpu


def _round_up(x, m):
    return (x + m - 1) // m * m


# ----------------------------- Pallas kernel ------------------------------ #
def gcn2_kernel(a_ref, x_ref, w1_ref, b1_ref, w2_ref, b2_ref, o_ref):
    # Layer 1: GCNConv(F_in -> H) + ReLU, reassociated as (A @ X) @ W1 so the
    # N x N adjacency matmul runs with K = F_in instead of K = H.
    ax = jnp.dot(a_ref[...], x_ref[...], preferred_element_type=jnp.float32)
    h1 = jnp.dot(ax.astype(jnp.bfloat16), w1_ref[...],
                 preferred_element_type=jnp.float32) + b1_ref[...]
    h1 = jnp.maximum(h1, 0.0)

    # Layer 2: GCNConv(H -> H) + ReLU (contraction widths equal; keep A@(H1@W2)).
    hw = jnp.dot(h1.astype(jnp.bfloat16), w2_ref[...],
                 preferred_element_type=jnp.float32)
    h2 = jnp.dot(a_ref[...], hw.astype(jnp.bfloat16),
                 preferred_element_type=jnp.float32) + b2_ref[...]
    o_ref[...] = jnp.maximum(h2, 0.0)


def gnn_forward(a_hat, x, w1, b1, w2, b2):
    n, f_in = x.shape
    h = w2.shape[1]

    # Pad sublane (N -> multiple of 8) and lane (H -> multiple of 128) dims.
    n_pad = _round_up(n, 8)
    h_pad = _round_up(h, 128)

    a_p = jnp.zeros((n_pad, n_pad), jnp.bfloat16).at[:n, :n].set(
        a_hat.astype(jnp.bfloat16))
    x_p = jnp.zeros((n_pad, f_in), jnp.bfloat16).at[:n, :].set(
        x.astype(jnp.bfloat16))
    w1_p = jnp.zeros((f_in, h_pad), jnp.bfloat16).at[:, :h].set(
        w1.astype(jnp.bfloat16))
    b1_p = jnp.zeros((1, h_pad), jnp.float32).at[:, :h].set(b1)
    w2_p = jnp.zeros((h_pad, h_pad), jnp.bfloat16).at[:h, :h].set(
        w2.astype(jnp.bfloat16))
    b2_p = jnp.zeros((1, h_pad), jnp.float32).at[:, :h].set(b2)

    out = pl.pallas_call(
        gcn2_kernel,
        out_shape=jax.ShapeDtypeStruct((n_pad, h_pad), jnp.float32),
        in_specs=[pl.BlockSpec(memory_space=pltpu.MemorySpace.VMEM)] * 6,
        out_specs=pl.BlockSpec(memory_space=pltpu.MemorySpace.VMEM),
    )(a_p, x_p, w1_p, b1_p, w2_p, b2_p)
    return out[:n, :h]


# ------------------------- Graph preprocessing (glue) ---------------------- #
def build_norm_adj(edge_index, edge_weight, num_nodes):
    """Dense symmetric-normalized adjacency with self-loops (PyG gcn_norm)."""
    src = edge_index[0]
    dst = edge_index[1]
    loop = jnp.arange(num_nodes, dtype=src.dtype)
    src = jnp.concatenate([src, loop])
    dst = jnp.concatenate([dst, loop])
    ew = jnp.concatenate(
        [edge_weight.astype(jnp.float32),
         jnp.ones((num_nodes,), jnp.float32)])
    deg = jnp.zeros((num_nodes,), jnp.float32).at[dst].add(ew)
    dinv = jnp.where(deg > 0, jax.lax.rsqrt(deg), 0.0)
    norm = dinv[src] * ew * dinv[dst]
    # A_hat[i, j] accumulates the norm of every edge j -> i.
    a_hat = jnp.zeros((num_nodes, num_nodes), jnp.float32).at[dst, src].add(norm)
    return a_hat


def glorot(key, shape):
    fan_in, fan_out = shape
    limit = jnp.sqrt(6.0 / (fan_in + fan_out))
    return jax.random.uniform(key, shape, jnp.float32, -limit, limit)


# Pure-JAX reference with the same bf16-operand / f32-accumulate math.
def gnn_reference_bf16(a_hat, x, w1, b1, w2, b2):
    a_bf = a_hat.astype(jnp.bfloat16)
    ax = jnp.dot(a_bf, x.astype(jnp.bfloat16),
                 preferred_element_type=jnp.float32)
    h1 = jnp.maximum(
        jnp.dot(ax.astype(jnp.bfloat16), w1.astype(jnp.bfloat16),
                preferred_element_type=jnp.float32) + b1, 0.0)
    hw = jnp.dot(h1.astype(jnp.bfloat16), w2.astype(jnp.bfloat16),
                 preferred_element_type=jnp.float32)
    h2 = jnp.dot(a_bf, hw.astype(jnp.bfloat16),
                 preferred_element_type=jnp.float32) + b2
    return jnp.maximum(h2, 0.0)


# --------------------------------- main ------------------------------------ #
if __name__ == "__main__":
    num_nodes = 8
    in_channels = 4
    hidden_channels = 32

    key = jax.random.PRNGKey(0)
    k_x, k_ei, k_ew, k_w1, k_w2 = jax.random.split(key, 5)

    # Node features, random sparse graph (16 directed edges), positive weights.
    x = jax.random.normal(k_x, (num_nodes, in_channels), jnp.float32)
    edge_index = jax.random.randint(k_ei, (2, 16), 0, num_nodes, jnp.int32)
    edge_weight = jax.random.uniform(k_ew, (16,), jnp.float32, 0.5, 1.5)

    # Deterministic parameter init (glorot weights, zero biases, like PyG).
    w1 = glorot(k_w1, (in_channels, hidden_channels))
    b1 = jnp.zeros((1, hidden_channels), jnp.float32)
    w2 = glorot(k_w2, (hidden_channels, hidden_channels))
    b2 = jnp.zeros((1, hidden_channels), jnp.float32)

    a_hat = build_norm_adj(edge_index, edge_weight, num_nodes)

    out = gnn_forward(a_hat, x, w1, b1, w2, b2)
    out = jax.block_until_ready(out)
    assert out.shape == (num_nodes, hidden_channels)

    # Exact-math check against the same bf16/f32 mixed-precision reference.
    ref_bf16 = gnn_reference_bf16(a_hat, x, w1, b1, w2, b2)
    assert jnp.allclose(out, ref_bf16, atol=1e-3, rtol=1e-3)

    # Loose check against the pure-f32 math of the original module.
    ref1 = jnp.maximum(a_hat @ (x @ w1) + b1, 0.0)
    ref_f32 = jnp.maximum(a_hat @ (ref1 @ w2) + b2, 0.0)
    assert jnp.allclose(out, ref_f32, atol=5e-2, rtol=5e-2)

    print("KERNEL_OK")
</pallas_src>

<mosaic_0001>
module attributes {stable_mosaic.version = 11 : i64} {
  func.func @gcn2_kernel(%arg0: memref<8x8xbf16, #tpu.memory_space<vmem>>, %arg1: memref<8x4xbf16, #tpu.memory_space<vmem>>, %arg2: memref<4x128xbf16, #tpu.memory_space<vmem>>, %arg3: memref<1x128xf32, #tpu.memory_space<vmem>>, %arg4: memref<128x128xbf16, #tpu.memory_space<vmem>>, %arg5: memref<1x128xf32, #tpu.memory_space<vmem>>, %arg6: memref<8x128xf32, #tpu.memory_space<vmem>>) attributes {dimension_semantics = [], scalar_prefetch = 0 : i64, scratch_operands = 0 : i64, tpu.core_type = #tpu.core_type<tc>} {
    %c0 = arith.constant 0 : index
    %c0_0 = arith.constant 0 : index
    %0 = vector.load %arg0[%c0, %c0_0] : memref<8x8xbf16, #tpu.memory_space<vmem>>, vector<8x8xbf16>
    %c0_1 = arith.constant 0 : index
    %c0_2 = arith.constant 0 : index
    %1 = vector.load %arg1[%c0_1, %c0_2] : memref<8x4xbf16, #tpu.memory_space<vmem>>, vector<8x4xbf16>
    %cst = arith.constant dense<0.000000e+00> : vector<8x4xf32>
    %2 = tpu.matmul %0, %1, %cst {dimension_numbers = #tpu.dot_dimension_numbers<[1], [0], [0], [1], [0, 0, 1, 1], [], []>} : vector<8x8xbf16>, vector<8x4xbf16>, vector<8x4xf32> -> vector<8x4xf32>
    %3 = arith.truncf %2 : vector<8x4xf32> to vector<8x4xbf16>
    %c0_3 = arith.constant 0 : index
    %c0_4 = arith.constant 0 : index
    %4 = vector.load %arg2[%c0_3, %c0_4] : memref<4x128xbf16, #tpu.memory_space<vmem>>, vector<4x128xbf16>
    %cst_5 = arith.constant dense<0.000000e+00> : vector<8x128xf32>
    %5 = tpu.matmul %3, %4, %cst_5 {dimension_numbers = #tpu.dot_dimension_numbers<[1], [0], [0], [1], [0, 0, 1, 1], [], []>} : vector<8x4xbf16>, vector<4x128xbf16>, vector<8x128xf32> -> vector<8x128xf32>
    %c0_6 = arith.constant 0 : index
    %c0_7 = arith.constant 0 : index
    %6 = vector.load %arg3[%c0_6, %c0_7] : memref<1x128xf32, #tpu.memory_space<vmem>>, vector<1x128xf32>
    %7 = vector.broadcast %6 : vector<1x128xf32> to vector<8x128xf32>
    %8 = arith.addf %5, %7 : vector<8x128xf32>
    %cst_8 = arith.constant 0.000000e+00 : f32
    %9 = vector.broadcast %cst_8 : f32 to vector<8x128xf32>
    %10 = arith.maximumf %8, %9 : vector<8x128xf32>
    %11 = arith.truncf %10 : vector<8x128xf32> to vector<8x128xbf16>
    %c0_9 = arith.constant 0 : index
    %c0_10 = arith.constant 0 : index
    %12 = vector.load %arg4[%c0_9, %c0_10] : memref<128x128xbf16, #tpu.memory_space<vmem>>, vector<128x128xbf16>
    %cst_11 = arith.constant dense<0.000000e+00> : vector<8x128xf32>
    %13 = tpu.matmul %11, %12, %cst_11 {dimension_numbers = #tpu.dot_dimension_numbers<[1], [0], [0], [1], [0, 0, 1, 1], [], []>} : vector<8x128xbf16>, vector<128x128xbf16>, vector<8x128xf32> -> vector<8x128xf32>
    %c0_12 = arith.constant 0 : index
    %c0_13 = arith.constant 0 : index
    %14 = vector.load %arg0[%c0_12, %c0_13] : memref<8x8xbf16, #tpu.memory_space<vmem>>, vector<8x8xbf16>
    %15 = arith.truncf %13 : vector<8x128xf32> to vector<8x128xbf16>
    %cst_14 = arith.constant dense<0.000000e+00> : vector<8x128xf32>
    %16 = tpu.matmul %14, %15, %cst_14 {dimension_numbers = #tpu.dot_dimension_numbers<[1], [0], [0], [1], [0, 0, 1, 1], [], []>} : vector<8x8xbf16>, vector<8x128xbf16>, vector<8x128xf32> -> vector<8x128xf32>
    %c0_15 = arith.constant 0 : index
    %c0_16 = arith.constant 0 : index
    %17 = vector.load %arg5[%c0_15, %c0_16] : memref<1x128xf32, #tpu.memory_space<vmem>>, vector<1x128xf32>
    %18 = vector.broadcast %17 : vector<1x128xf32> to vector<8x128xf32>
    %19 = arith.addf %16, %18 : vector<8x128xf32>
    %cst_17 = arith.constant 0.000000e+00 : f32
    %20 = vector.broadcast %cst_17 : f32 to vector<8x128xf32>
    %21 = arith.maximumf %19, %20 : vector<8x128xf32>
    %c0_18 = arith.constant 0 : index
    %c0_19 = arith.constant 0 : index
    %22 = vector.load %arg6[%c0_18, %c0_19] : memref<8x128xf32, #tpu.memory_space<vmem>>, vector<8x128xf32>
    tpu.vector_store %arg6[%c0_18, %c0_19], %21 {strides = array<i32>} : memref<8x128xf32, #tpu.memory_space<vmem>>, vector<8x128xf32>,
    return
  }
}

</mosaic_0001>

<bundles_post_ra>
// kernel: tpu_custom_call.1
= control target key start
LH: loop header
LB: loop body
LE: loop exit
PB: predicated region body
PF: predicated region fallthrough
CT: control target
= control target key end

     0   :  { %11 = vsyncpa [#allocation3], 0  ;;  %s536_s0 = inlined_call_operand.vmem [shape: bf16[8,8], index: 0, kind: input, shape index: {}]   ;;  %s537_s1 = inlined_call_operand.vmem [shape: bf16[8,4], index: 1, kind: input, shape index: {}]   ;;  %s538_s2 = inlined_call_operand.vmem [shape: bf16[4,128], index: 2, kind: input, shape index: {}]   ;;  %s539_s3 = inlined_call_operand.vmem [shape: f32[1,128], index: 3, kind: input, shape index: {}]   ;;  %s540_s4 = inlined_call_operand.hbm [shape: bf16[128,128], index: 4, kind: input, shape index: {}]   ;;  %s541_s5 = inlined_call_operand.vmem [shape: f32[1,128], index: 5, kind: input, shape index: {}]   ;;  %s542_s6 = inlined_call_operand.hbm [shape: f32[8,128], index: 6, kind: output, shape index: {}]  }
   0x1   :  { %12 = vsyncpa [#allocation4], 0  ;;  %s448_s21 = smov [#allocation2]   ;;  %s400_s25 = scalar_lea.hbm %s540_s4, 1024 }
   0x2   :  { %s26_s22 = sshll.u32 %s448_s21, 4  ;;  %p401_p0 = scmp.ne.s32.totalorder %s540_s4, %s400_s25  ;;  %s27_s22 = int_to_ptr.vmem [resolvable:$true] %s26_s22 }
   0x3   :  { %p404_p1 = scmp.lt.u32.totalorder %s400_s25, %s540_s4 }
   0x5   :  { %p406_p2 = pnand %p404_p1, %p401_p0 }
   0x7   :  { %409 = shalt.err (!%p406_p2)
}
   0x8   :  { %s410_s30 = scalar_lea.vmem %s27_s22, 1024  ;;  %p415_p4 = scmp.lt.s32.totalorder %s27_s22, %s27_s22 }
   0x9   :  { %p411_p3 = scmp.ne.s32.totalorder %s27_s22, %s410_s30  ;;  %p416_p5 = scmp.lt.s32.totalorder %s410_s30, %s410_s30 }
   0xb   :  { %p417_p6 = por %p416_p5, %p415_p4 }
   0xd   :  { %p418_p7 = pnand %p417_p6, %p411_p3 }
   0xf   :  { %421 = shalt.err (!%p418_p7)
}
  0x10   :  { %s449_s7 = smov 64   ;;  %s450_s8 = smov 4  }
  0x11   :  { %32 = dma.hbm_to_vmem [thread:$0]  %s540_s4, 1024, %s27_s22, [#allocation3], %s449_s7, %s449_s7, %s450_s8  }
  0x12   :  { %444 = dma.done.wait [#allocation3], 1024  }
  0x13   :  { %445 = vsyncadd [#allocation3], 4294966272  ;;  %v451_v0 = vmov 0.0   ;;  %vm452_vm0 = vmmov 0   ;;  %vm45_vm1 = vcmask 1043456   ;;  %vm41_vm2 = vcmask 64512  }
  0x14   :  { %348 = vmatprep.subr.bf16.mxu1 %v451_v0  ;;  %350 = vmatprep.mubr.msk.bf16.mxu1 %vm452_vm0, %v451_v0  ;;  %v40_v1 = vld [vmem:[%s537_s1] sm:$0xf]  ;;  %vm102_vm3 = vcmask 1041408   ;;  %v393_v7 = vld [vmem:[#allocation2 + $0x8] sm:$0xff]   ;;  %v394_v8 = vld [vmem:[#allocation2 + $0x10] sm:$0xff]   ;;  %vm98_vm4 = vcmask 31744  }
  0x15   :  { %360 = vmatprep.subr.bf16.mxu0 %v451_v0  ;;  %376 = vmatprep.mubr.msk.bf16.mxu0 %vm452_vm0, %v451_v0  ;;  %v39_v2 = vld [vmem:[%s536_s0] sm:$0xf]  ;;  %v47_v3 = vsel %vm45_vm1, %v40_v1, 0  ;;  %v395_v9 = vld [vmem:[#allocation2 + $0x18] sm:$0xff]   ;;  %v397_v11 = vld [vmem:[#allocation2 + $0x28] sm:$0xff]   ;;  %s453_s16 = smov [#allocation5]  }
  0x16   :  { %349 = vmatpush3.bf16.msra.mxu1 %v47_v3  ;;  %v90_v4 = vld [vmem:[%s538_s2] sm:$0x3]  ;;  %v398_v17 = vld [vmem:[#allocation2 + $0x30] sm:$0xff]   ;;  %v399_v18 = vld [vmem:[#allocation2 + $0x38] sm:$0xff]   ;;  %s311_s17 = sshll.u32 %s453_s16, 4  ;;  %s312_s17 = int_to_ptr.vmem [resolvable:$true] %s311_s17 }
  0x17   :  { %354 = vmatprep.subr.bf16.mxu1 %v451_v0  ;;  %v104_v5 = vsel %vm102_vm3, %v90_v4, 0  ;;  %v392_v6 = vld [vmem:[#allocation2] sm:$0xff]   ;;  %s422_s18 = scalar_lea.vmem %s312_s17, 128  ;;  %p427_p9 = scmp.lt.s32.totalorder %s312_s17, %s312_s17 }
  0x18   :  { %361 = vmatpush3.bf16.msra.mxu0 %v392_v6  ;;  %v396_v10 = vld [vmem:[#allocation2 + $0x20] sm:$0xff]   ;;  %p423_p8 = scmp.ne.s32.totalorder %s312_s17, %s422_s18  ;;  %p428_p10 = scmp.lt.s32.totalorder %s422_s18, %s422_s18 }
  0x19   :  { %351 = vmatmul.mubr.msk.bf16.vlgmr.msra.gmra.mrb[0].mxu1 %vm41_vm2, %v39_v2  ;;  %362 = vmatprep.subr.bf16.mxu0 %v451_v0  ;;  %v321_v19 = vld [vmem:[%s539_s3] ss:$0 sm:$0xff] }
  0x1a   :  { %356 = vmatprep.mubr.msk.bf16.mxu1 %vm452_vm0, %v451_v0  ;;  %355 = vmatpush3.bf16.msra.mxu1 %v104_v5  ;;  %v331_v33 = vld [vmem:[%s541_s5] ss:$0 sm:$0xff]  ;;  %p429_p11 = por %p428_p10, %p427_p9 }
  0x1b   :  { %380 = vmatprep.subr.bf16.mxu1 %v451_v0 }
  0x1c   :  { %363 = vmatpush3.bf16.msra.mxu0 %v393_v7  ;;  %p430_p12 = pnand %p429_p11, %p423_p8 }
  0x1d   :  { %364 = vmatprep.subr.bf16.mxu0 %v451_v0 }
  0x20   :  { %365 = vmatpush3.bf16.msra.mxu0 %v394_v8 }
  0x21   :  { %366 = vmatprep.subr.bf16.mxu0 %v451_v0 }
  0x24   :  { %367 = vmatpush3.bf16.msra.mxu0 %v395_v9 }
  0x25   :  { %368 = vmatprep.subr.bf16.mxu0 %v451_v0 }
  0x28   :  { %369 = vmatpush3.bf16.msra.mxu0 %v396_v10 }
  0x29   :  { %370 = vmatprep.subr.bf16.mxu0 %v451_v0 }
  0x2c   :  { %371 = vmatpush3.bf16.msra.mxu0 %v397_v11 }
  0x2d   :  { %372 = vmatprep.subr.bf16.mxu0 %v451_v0 }
  0x30   :  { %373 = vmatpush3.bf16.msra.mxu0 %v398_v17 }
  0x31   :  { %374 = vmatprep.subr.bf16.mxu0 %v451_v0 }
  0x34   :  { %375 = vmatpush3.bf16.msra.mxu0 %v399_v18 }
  0xec   :  { %v83_v12 = vpop.f32.mrb[0].mxu1 }
  0xed   :  { %v89_v13 = vpack.c.bf16 %v83_v12, %v83_v12  ;;  %v352_v14 = vpop.f32.mrb[1].mxu1 }
  0xee   :  { %v86_v15 = vpop.f32.mrb[2].mxu1 }
  0xef   :  { %v353_v16 = vpop.f32.mrb[3].mxu1  ;;  %357 = vmatmul.mubr.msk.bf16.vlgmr.msra.gmra.mrb[4].mxu1 %vm98_vm4, %v89_v13 }
  0xf0   :  { %382 = vmatprep.mubr.msk.bf16.mxu1 %vm452_vm0, %v451_v0 }
 0x1c2   :  { %v140_v20 = vpop.f32.mrb[4].mxu1 }
 0x1c3   :  { %v141_v21 = vadd.f32 %v321_v19, %v140_v20  ;;  %v358_v22 = vpop.f32.mrb[5].mxu1 }
 0x1c4   :  { %v143_v23 = vpop.f32.mrb[6].mxu1 }
 0x1c5   :  { %v146_v24 = vmax.f32 %v141_v21, 0.0  ;;  %v359_v25 = vpop.f32.mrb[7].mxu1 }
 0x1c7   :  { %v147_v26 = vpack.c.bf16 %v146_v24, %v146_v24 }
 0x1c9   :  { %377 = vmatmul.mubr.bf16.vlgmr.msra.gmra.mrb[0].mxu0 %v147_v26 }
 0x29c   :  { %v246_v27 = vpop.f32.mrb[0].mxu0 }
 0x29d   :  { %v252_v28 = vpack.c.bf16 %v246_v27, %v246_v27  ;;  %v378_v29 = vpop.f32.mrb[1].mxu0 }
 0x29e   :  { %v249_v30 = vpop.f32.mrb[2].mxu0 }
 0x29f   :  { %v261_v31 = vsel %vm45_vm1, %v252_v28, 0  ;;  %v379_v32 = vpop.f32.mrb[3].mxu0 }
 0x2a0   :  { %381 = vmatpush3.bf16.msra.mxu1 %v261_v31 }
 0x2a3   :  { %383 = vmatmul.mubr.msk.bf16.vlgmr.msra.gmra.mrb[8].mxu1 %vm41_vm2, %v39_v2 }
 0x376   :  { %v297_v34 = vpop.f32.mrb[8].mxu1 }
 0x377   :  { %v298_v35 = vadd.f32 %v331_v33, %v297_v34  ;;  %v384_v36 = vpop.f32.mrb[9].mxu1 }
 0x378   :  { %v300_v37 = vpop.f32.mrb[10].mxu1 }
 0x379   :  { %v303_v38 = vmax.f32 %v298_v35, 0.0  ;;  %v385_v39 = vpop.f32.mrb[11].mxu1 }
 0x37b   :  { %304 = vst [vmem:[#allocation5] sm:$0xff] %v303_v38 }
 0x37c   :  { %433 = shalt.err (!%p430_p12)
}
 0x37d   :  { %s434_s5 = scalar_lea.hbm %s542_s6, 128 }
 0x37e   :  { %p435_p13 = scmp.ne.s32.totalorder %s542_s6, %s434_s5  ;;  %p438_p0 = scmp.lt.u32.totalorder %s434_s5, %s542_s6 }
 0x380   :  { %p440_p1 = pnand %p438_p0, %p435_p13 }
 0x382   :  { %443 = shalt.err (!%p440_p1)
}
 0x383   :  { %314 = dma.vmem_to_hbm [thread:$0]  %s312_s17, 128, %s542_s6, [#allocation4]  }
 0x384   :  { %446 = dma.done.wait [#allocation4], 128  }
 0x385   :  { %447 = vsyncadd [#allocation4], 4294967168 }
 0x386   :  { %318 = vsyncpa [#allocation3], 1 }
 0x387   :  { %319 = vsyncpa [#allocation4], 1 }

</bundles_post_ra>
